<compile_context>
chip_gen: v7x
topology: tpu7x:2x2x1
jax: 0.10.0
libtpu: 0.0.40
codegen_flags: <defaults>
</compile_context>

<pallas_src>
import functools
import math

import jax
import jax.numpy as jnp
from jax.experimental import pallas as pl
from jax.experimental.pallas import tpu as pltpu

F32 = jnp.float32
BF16 = jnp.bfloat16
SMEM = pltpu.MemorySpace.SMEM

LN_EPS = 1e-12
NEG_INF = -1e9
_MIB = 1 << 20


# ----------------------------------------------------------------------------
# small in-kernel helpers (traced inside kernels, f32 elementwise math)
# ----------------------------------------------------------------------------
def _layernorm(h, g, b, eps=LN_EPS):
    mu = jnp.mean(h, axis=-1, keepdims=True)
    var = jnp.mean((h - mu) * (h - mu), axis=-1, keepdims=True)
    return (h - mu) * jax.lax.rsqrt(var + eps) * g + b


def _gelu(y):
    c = 0.7978845608028654  # sqrt(2/pi), tanh-approx GELU
    return 0.5 * y * (1.0 + jnp.tanh(c * (y + 0.044715 * y * y * y)))


def _vmem_limit(*block_bytes, temps_bytes=0):
    """Explicit VMEM budget: double-buffered blocks + in-kernel temporaries,
    clamped to [32 MiB, 64 MiB] so it stays valid on v7x (64 MiB per TC)."""
    need = 2 * sum(block_bytes) + temps_bytes + 4 * _MIB
    return int(min(max(need, 32 * _MIB), 64 * _MIB))


# ----------------------------------------------------------------------------
# Pallas kernels
# ----------------------------------------------------------------------------
def _emb_ln_kernel(x_ref, g_ref, b_ref, o_ref):
    o_ref[...] = _layernorm(x_ref[...], g_ref[...], b_ref[...]
                            ).astype(o_ref.dtype)


def embedding_layernorm(x, gamma, beta, *, n_seq, seq_len):
    """Embedding LayerNorm, gridded over sequences; writes bf16 activations."""
    t, h = x.shape
    blk_bytes = seq_len * h * (4 + 2) + 2 * h * 4
    return pl.pallas_call(
        _emb_ln_kernel,
        out_shape=jax.ShapeDtypeStruct((t, h), BF16),
        grid=(n_seq,),
        in_specs=[pl.BlockSpec((seq_len, h), lambda i: (i, 0)),
                  pl.BlockSpec((1, h), lambda i: (0, 0)),
                  pl.BlockSpec((1, h), lambda i: (0, 0))],
        out_specs=pl.BlockSpec((seq_len, h), lambda i: (i, 0)),
        compiler_params=pltpu.CompilerParams(
            dimension_semantics=("parallel",),
            vmem_limit_bytes=_vmem_limit(blk_bytes)),
    )(x, gamma.reshape(1, h), beta.reshape(1, h))


def _encoder_layer_kernel(x_ref, bias_ref, wqkv_ref, bqkv_ref, wo_ref, bo_ref,
                          ln1g_ref, ln1b_ref, w1_ref, b1_ref, w2_ref, b2_ref,
                          ln2g_ref, ln2b_ref, o_ref, *, n_heads, dh):
    """One full BERT encoder layer for one sequence (eval-mode dropout):
       softmax(scaled-QK^T + mask)V -> out proj -> +res -> LN1
       -> GELU(x@W1+b1)@W2+b2 -> +res -> LN2."""
    h = n_heads * dh
    x_bf = x_ref[...]                                      # (S, H) bf16
    x = x_bf.astype(F32)                                   # residual in f32

    # fused QKV projection (1/sqrt(dh) already folded into Wq/bq columns)
    qkv = jnp.dot(x_bf, wqkv_ref[...],
                  preferred_element_type=F32) + bqkv_ref[...]     # (S, 3H) f32
    qkv_bf = qkv.astype(BF16)                              # one full-width cast
    bias = bias_ref[0]                                     # (1, S) additive mask

    # per-head attention via static lane slices; each head's context is kept
    # in bf16 and concatenated, so the output projection is ONE K=H matmul.
    ctx_parts = []
    for hd in range(n_heads):
        q = qkv_bf[:, hd * dh:(hd + 1) * dh]               # (S, dh)
        k = qkv_bf[:, h + hd * dh:h + (hd + 1) * dh]
        v = qkv_bf[:, 2 * h + hd * dh:2 * h + (hd + 1) * dh]
        s = jax.lax.dot_general(q, k, (((1,), (1,)), ((), ())),
                                preferred_element_type=F32)       # (S, S)
        s = s + bias
        s = s - jnp.max(s, axis=-1, keepdims=True)
        p = jnp.exp(s)
        p = p * pl.reciprocal(jnp.sum(p, axis=-1, keepdims=True), approx=True)
        ctx_parts.append(jnp.dot(p.astype(BF16), v,
                                 preferred_element_type=F32).astype(BF16))
    ctx = jnp.concatenate(ctx_parts, axis=-1)              # (S, H) bf16

    attn = jnp.dot(ctx, wo_ref[...],
                   preferred_element_type=F32) + bo_ref[...]
    # attention-output dropout (p=0.1) -> identity in eval mode
    h1 = _layernorm(attn + x, ln1g_ref[...], ln1b_ref[...])       # (S, H) f32

    # ---- FFN sub-layer ----
    y = jnp.dot(h1.astype(BF16), w1_ref[...],
                preferred_element_type=F32) + b1_ref[...]
    y = _gelu(y)
    z = jnp.dot(y.astype(BF16), w2_ref[...],
                preferred_element_type=F32) + b2_ref[...]
    # FFN-output dropout (p=0.1) -> identity in eval mode
    o_ref[...] = _layernorm(z + h1, ln2g_ref[...], ln2b_ref[...]
                            ).astype(o_ref.dtype)


def encoder_layer(x, bias, lkp, n_heads, dh):
    """One fused pallas_call per BERT encoder layer; grid over sequences."""
    t, h = x.shape
    b = bias.shape[0]
    s = t // b
    inter = lkp["w1"].shape[1]
    kernel = functools.partial(_encoder_layer_kernel, n_heads=n_heads, dh=dh)

    weight_bytes = ((h * 3 * h + h * h + h * inter + inter * h) * 2   # bf16 W
                    + (3 * h + h + inter + h + 4 * h) * 4)            # f32 b/LN
    act_bytes = 2 * s * h * 2 + s * 4                                 # x/out + bias
    temps_bytes = (s * 3 * h * (4 + 2)      # qkv f32 + bf16
                   + 2 * s * s * 4          # scores / probs
                   + 3 * s * h * 4          # ctx/attn/h1
                   + s * inter * (4 + 2))   # FFN intermediate

    return pl.pallas_call(
        kernel,
        out_shape=jax.ShapeDtypeStruct((t, h), BF16),
        grid=(b,),
        in_specs=[
            pl.BlockSpec((s, h), lambda i: (i, 0)),         # one sequence (bf16)
            pl.BlockSpec((1, 1, s), lambda i: (i, 0, 0)),   # mask bias [B,1,S]
            pl.BlockSpec((h, 3 * h), lambda i: (0, 0)),     # fused Wqkv (bf16)
            pl.BlockSpec((1, 3 * h), lambda i: (0, 0)),
            pl.BlockSpec((h, h), lambda i: (0, 0)),         # Wo (bf16)
            pl.BlockSpec((1, h), lambda i: (0, 0)),
            pl.BlockSpec((1, h), lambda i: (0, 0)),         # ln1 gamma
            pl.BlockSpec((1, h), lambda i: (0, 0)),         # ln1 beta
            pl.BlockSpec((h, inter), lambda i: (0, 0)),     # W1 (bf16)
            pl.BlockSpec((1, inter), lambda i: (0, 0)),
            pl.BlockSpec((inter, h), lambda i: (0, 0)),     # W2 (bf16)
            pl.BlockSpec((1, h), lambda i: (0, 0)),
            pl.BlockSpec((1, h), lambda i: (0, 0)),         # ln2 gamma
            pl.BlockSpec((1, h), lambda i: (0, 0)),         # ln2 beta
        ],
        out_specs=pl.BlockSpec((s, h), lambda i: (i, 0)),
        compiler_params=pltpu.CompilerParams(
            dimension_semantics=("parallel",),
            vmem_limit_bytes=_vmem_limit(weight_bytes, act_bytes,
                                         temps_bytes=temps_bytes)),
    )(x, bias, lkp["w_qkv"], lkp["b_qkv"], lkp["wo"], lkp["bo"],
      lkp["ln1_g"], lkp["ln1_b"], lkp["w1"], lkp["b1"], lkp["w2"], lkp["b2"],
      lkp["ln2_g"], lkp["ln2_b"])


def _head_logits_kernel(cls_ref, w_ref, b_ref, logit_ref):
    cls = cls_ref[...].astype(F32)                          # (B, H) CLS rows
    logit_ref[...] = (jnp.sum(cls * w_ref[...], axis=-1, keepdims=True)
                      + b_ref[0, 0])


def _head_loss_kernel(cls_ref, w_ref, b_ref, y_ref, wt_ref, logit_ref,
                      loss_ref):
    cls = cls_ref[...].astype(F32)                          # (B, H)
    logit = jnp.sum(cls * w_ref[...], axis=-1, keepdims=True) + b_ref[0, 0]
    logit_ref[...] = logit
    y = y_ref[...]                                          # (B, 1)
    w = wt_ref[0, 0]                                        # scalar BCE weight
    per = (jnp.maximum(logit, 0.0) - logit * y
           + jnp.log(1.0 + jnp.exp(-jnp.abs(logit))))       # stable BCE-w-logits
    loss_ref[...] = (jnp.sum(w * per, axis=0, keepdims=True)
                     / float(logit.shape[0]))


def classifier_head(x, cls_w_row, cls_b, b, s, labels=None, weight=None):
    """CLS extraction + dropout(identity) + Linear(H,1) [+ weighted BCE].
    x is viewed as (B, S*H); the (B,H) BlockSpec at block (0,0) DMAs ONLY the
    CLS token of each sequence (HBM traffic cut by a factor of S)."""
    h = x.shape[1]
    x2 = x.reshape(b, s * h)                                # metadata-only view
    cls_spec = pl.BlockSpec((b, h), lambda i: (0, 0))
    vlim = _vmem_limit(b * h * 2 + h * 4 + b * 4)
    if labels is None:
        return pl.pallas_call(
            _head_logits_kernel,
            out_shape=jax.ShapeDtypeStruct((b, 1), F32),
            grid=(1,),
            in_specs=[cls_spec,
                      pl.BlockSpec((1, h), lambda i: (0, 0)),
                      pl.BlockSpec(memory_space=SMEM)],
            out_specs=pl.BlockSpec((b, 1), lambda i: (0, 0)),
            compiler_params=pltpu.CompilerParams(vmem_limit_bytes=vlim),
        )(x2, cls_w_row, cls_b)
    logits, loss = pl.pallas_call(
        _head_loss_kernel,
        out_shape=(jax.ShapeDtypeStruct((b, 1), F32),
                   jax.ShapeDtypeStruct((1, 1), F32)),
        grid=(1,),
        in_specs=[cls_spec,
                  pl.BlockSpec((1, h), lambda i: (0, 0)),
                  pl.BlockSpec(memory_space=SMEM),
                  pl.BlockSpec((b, 1), lambda i: (0, 0)),
                  pl.BlockSpec(memory_space=SMEM)],
        out_specs=(pl.BlockSpec((b, 1), lambda i: (0, 0)),
                   pl.BlockSpec((1, 1), lambda i: (0, 0))),
        compiler_params=pltpu.CompilerParams(vmem_limit_bytes=vlim),
    )(x2, cls_w_row, cls_b, labels, weight)
    return logits, loss


# ----------------------------------------------------------------------------
# Model (tiny synthetic BERT encoder + binary classifier head)
# ----------------------------------------------------------------------------
CFG = dict(vocab=100, max_pos=64, hidden=128, heads=2, inter=512, layers=2)


def init_params(key, cfg):
    h, inter = cfg["hidden"], cfg["inter"]
    keys = iter(jax.random.split(key, 64))
    nrm = lambda shape: (0.02 * jax.random.normal(next(keys), shape)
                         ).astype(F32)
    p = {
        "word_emb": nrm((cfg["vocab"], h)),
        "pos_emb": nrm((cfg["max_pos"], h)),
        "type_emb": nrm((2, h)),
        "emb_ln_g": jnp.ones((h,), F32),
        "emb_ln_b": jnp.zeros((h,), F32),
        "cls_w": nrm((h, 1)),
        "cls_b": jnp.zeros((1,), F32),
        "layers": [],
    }
    for _ in range(cfg["layers"]):
        p["layers"].append({
            "wq": nrm((h, h)), "bq": jnp.zeros((h,), F32),
            "wk": nrm((h, h)), "bk": jnp.zeros((h,), F32),
            "wv": nrm((h, h)), "bv": jnp.zeros((h,), F32),
            "wo": nrm((h, h)), "bo": jnp.zeros((h,), F32),
            "ln1_g": jnp.ones((h,), F32), "ln1_b": jnp.zeros((h,), F32),
            "w1": nrm((h, inter)), "b1": jnp.zeros((inter,), F32),
            "w2": nrm((inter, h)), "b2": jnp.zeros((h,), F32),
            "ln2_g": jnp.ones((h,), F32), "ln2_b": jnp.zeros((h,), F32),
        })
    return p


def prepare_kernel_params(params, cfg):
    """Fold 1/sqrt(dh) into Wq, concat Wq|Wk|Wv, cast matmul weights to bf16."""
    h = cfg["hidden"]
    dh = h // cfg["heads"]
    scale = 1.0 / math.sqrt(dh)
    kp = {
        "cls_w_row": params["cls_w"].reshape(1, h).astype(F32),
        "cls_b": params["cls_b"].reshape(1, 1).astype(F32),
        "layers": [],
    }
    for lp in params["layers"]:
        w_qkv = jnp.concatenate([lp["wq"] * scale, lp["wk"], lp["wv"]], axis=1)
        b_qkv = jnp.concatenate([lp["bq"] * scale, lp["bk"], lp["bv"]], axis=0)
        kp["layers"].append({
            "w_qkv": w_qkv.astype(BF16),
            "b_qkv": b_qkv.reshape(1, 3 * h).astype(F32),
            "wo": lp["wo"].astype(BF16),
            "bo": lp["bo"].reshape(1, h).astype(F32),
            "ln1_g": lp["ln1_g"].reshape(1, h),
            "ln1_b": lp["ln1_b"].reshape(1, h),
            "w1": lp["w1"].astype(BF16),
            "b1": lp["b1"].reshape(1, -1).astype(F32),
            "w2": lp["w2"].astype(BF16),
            "b2": lp["b2"].reshape(1, h).astype(F32),
            "ln2_g": lp["ln2_g"].reshape(1, h),
            "ln2_b": lp["ln2_b"].reshape(1, h),
        })
    return kp


def bert_binary_classifier_forward(params, input_ids, attention_mask,
                                   labels=None, bce_weight=1.0, cfg=CFG):
    b, s = input_ids.shape
    h, n_heads = cfg["hidden"], cfg["heads"]
    dh = h // n_heads
    kp = prepare_kernel_params(params, cfg)

    # ---- embeddings (gather/add is JAX glue; LayerNorm is a Pallas kernel) --
    we = params["word_emb"][input_ids]                    # [B, S, H]
    pe = params["pos_emb"][jnp.arange(s)]                 # [S, H]
    te = params["type_emb"][0]                            # [H]
    emb = (we + pe[None, :, :] + te[None, None, :]).reshape(b * s, h)
    x = embedding_layernorm(emb, params["emb_ln_g"], params["emb_ln_b"],
                            n_seq=b, seq_len=s)           # bf16 activations
    # embedding dropout (p=0.1) -> identity in eval mode

    # additive attention bias from padding mask: [B, 1, S] (broadcast over
    # heads / query rows happens inside the kernel)
    bias = ((1.0 - attention_mask.astype(F32)) * NEG_INF)[:, None, :]

    # ---- encoder layers: ONE fused pallas_call per layer ----
    for lkp in kp["layers"]:
        x = encoder_layer(x, bias, lkp, n_heads, dh)

    # ---- classifier head: CLS -> dropout(identity) -> Linear(H,1) [+ BCE] --
    if labels is not None:
        logits, loss = classifier_head(
            x, kp["cls_w_row"], kp["cls_b"], b, s,
            labels=labels.reshape(b, 1).astype(F32),
            weight=jnp.asarray(bce_weight, F32).reshape(1, 1))
        return loss[0, 0], logits
    return classifier_head(x, kp["cls_w_row"], kp["cls_b"], b, s)


# ----------------------------------------------------------------------------
# main
# ----------------------------------------------------------------------------
if __name__ == "__main__":
    key = jax.random.PRNGKey(0)
    k_param, k_ids = jax.random.split(key)

    B, S = 2, 8
    params = init_params(k_param, CFG)

    input_ids = jax.random.randint(k_ids, (B, S), 0, CFG["vocab"],
                                   dtype=jnp.int32)
    attention_mask = jnp.ones((B, S), jnp.int32).at[1, 6:].set(0)
    labels = jnp.array([0.0, 1.0], jnp.float32)
    yt_weight = jnp.array([1.0, 3.0], jnp.float32)  # nn.BCEWithLogitsLoss(yt_weight[1])

    loss, logits = bert_binary_classifier_forward(
        params, input_ids, attention_mask, labels=labels,
        bce_weight=yt_weight[1])
    logits_only = bert_binary_classifier_forward(params, input_ids,
                                                 attention_mask)

    jax.block_until_ready((loss, logits, logits_only))
    assert logits.shape == (B, 1) and logits_only.shape == (B, 1)
    assert loss.shape == ()
    print("KERNEL_OK")
</pallas_src>

<mosaic_0001>
module attributes {stable_mosaic.version = 11 : i64} {
  func.func @_emb_ln_kernel(%arg0: i32, %arg1: memref<8x128xf32, #tpu.memory_space<vmem>>, %arg2: memref<1x128xf32, #tpu.memory_space<vmem>>, %arg3: memref<1x128xf32, #tpu.memory_space<vmem>>, %arg4: memref<8x128xbf16, #tpu.memory_space<vmem>>) attributes {dimension_semantics = [#tpu.dimension_semantics<parallel>], iteration_bounds = array<i64: 2>, scalar_prefetch = 0 : i64, scratch_operands = 0 : i64, tpu.core_type = #tpu.core_type<tc>, window_params = [{transform_indices = @transform_0, window_bounds = array<i64: 8, 128>}, {pipeline_mode = #tpu.pipeline_mode<synchronous>, transform_indices = @transform_1, window_bounds = array<i64: 1, 128>}, {pipeline_mode = #tpu.pipeline_mode<synchronous>, transform_indices = @transform_2, window_bounds = array<i64: 1, 128>}, {transform_indices = @transform_3, window_bounds = array<i64: 8, 128>}]} {
    %c0 = arith.constant 0 : index
    %c0_0 = arith.constant 0 : index
    %0 = vector.load %arg1[%c0, %c0_0] : memref<8x128xf32, #tpu.memory_space<vmem>>, vector<8x128xf32>
    %c0_1 = arith.constant 0 : index
    %c0_2 = arith.constant 0 : index
    %1 = vector.load %arg2[%c0_1, %c0_2] : memref<1x128xf32, #tpu.memory_space<vmem>>, vector<1x128xf32>
    %c0_3 = arith.constant 0 : index
    %c0_4 = arith.constant 0 : index
    %2 = vector.load %arg3[%c0_3, %c0_4] : memref<1x128xf32, #tpu.memory_space<vmem>>, vector<1x128xf32>
    %cst = arith.constant dense<0.000000e+00> : vector<8xf32>
    %3 = vector.multi_reduction <add>, %0, %cst [1] : vector<8x128xf32> to vector<8xf32>
    %4 = vector.shape_cast %3 : vector<8xf32> to vector<8x1xf32>
    %cst_5 = arith.constant 1.280000e+02 : f32
    %5 = vector.broadcast %cst_5 : f32 to vector<8x1xf32>
    %6 = arith.divf %4, %5 : vector<8x1xf32>
    %7 = vector.broadcast %6 : vector<8x1xf32> to vector<8x128xf32>
    %8 = arith.subf %0, %7 : vector<8x128xf32>
    %9 = vector.broadcast %6 : vector<8x1xf32> to vector<8x128xf32>
    %10 = arith.subf %0, %9 : vector<8x128xf32>
    %11 = arith.mulf %8, %10 : vector<8x128xf32>
    %cst_6 = arith.constant dense<0.000000e+00> : vector<8xf32>
    %12 = vector.multi_reduction <add>, %11, %cst_6 [1] : vector<8x128xf32> to vector<8xf32>
    %13 = vector.shape_cast %12 : vector<8xf32> to vector<8x1xf32>
    %cst_7 = arith.constant 1.280000e+02 : f32
    %14 = vector.broadcast %cst_7 : f32 to vector<8x1xf32>
    %15 = arith.divf %13, %14 : vector<8x1xf32>
    %16 = vector.broadcast %6 : vector<8x1xf32> to vector<8x128xf32>
    %17 = arith.subf %0, %16 : vector<8x128xf32>
    %cst_8 = arith.constant 9.99999996E-13 : f32
    %18 = vector.broadcast %cst_8 : f32 to vector<8x1xf32>
    %19 = arith.addf %15, %18 : vector<8x1xf32>
    %20 = math.rsqrt %19 : vector<8x1xf32>
    %21 = vector.broadcast %20 : vector<8x1xf32> to vector<8x128xf32>
    %22 = arith.mulf %17, %21 : vector<8x128xf32>
    %23 = vector.broadcast %1 : vector<1x128xf32> to vector<8x128xf32>
    %24 = arith.mulf %22, %23 : vector<8x128xf32>
    %25 = vector.broadcast %2 : vector<1x128xf32> to vector<8x128xf32>
    %26 = arith.addf %24, %25 : vector<8x128xf32>
    %27 = arith.truncf %26 : vector<8x128xf32> to vector<8x128xbf16>
    %c0_9 = arith.constant 0 : index
    %c0_10 = arith.constant 0 : index
    %28 = vector.load %arg4[%c0_9, %c0_10] : memref<8x128xbf16, #tpu.memory_space<vmem>>, vector<8x128xbf16>
    tpu.vector_store %arg4[%c0_9, %c0_10], %27 {strides = array<i32>} : memref<8x128xbf16, #tpu.memory_space<vmem>>, vector<8x128xbf16>,
    return
  }
  func.func @transform_0(%arg0: i32) -> (i32, i32) {
    %c0_i32 = arith.constant 0 : i32
    %c0_i32_0 = arith.constant 0 : i32
    return %arg0, %c0_i32 : i32, i32
  }
  func.func @transform_1(%arg0: i32) -> (i32, i32) {
    %c0_i32 = arith.constant 0 : i32
    %c0_i32_0 = arith.constant 0 : i32
    %c0_i32_1 = arith.constant 0 : i32
    return %c0_i32, %c0_i32_0 : i32, i32
  }
  func.func @transform_2(%arg0: i32) -> (i32, i32) {
    %c0_i32 = arith.constant 0 : i32
    %c0_i32_0 = arith.constant 0 : i32
    %c0_i32_1 = arith.constant 0 : i32
    return %c0_i32, %c0_i32_0 : i32, i32
  }
  func.func @transform_3(%arg0: i32) -> (i32, i32) {
    %c0_i32 = arith.constant 0 : i32
    %c0_i32_0 = arith.constant 0 : i32
    return %arg0, %c0_i32 : i32, i32
  }
}

</mosaic_0001>

<bundles_post_ra>
// kernel: tpu_custom_call.1
= control target key start
LH: loop header
LB: loop body
LE: loop exit
PB: predicated region body
PF: predicated region fallthrough
CT: control target
= control target key end

     0   :  { %8 = vsyncpa [#allocation3], 0  ;;  %s651_s0 = inlined_call_operand.hbm [shape: f32[16,128], index: 0, kind: input, shape index: {}]   ;;  %s652_s1 = inlined_call_operand.vmem [shape: f32[1,128], index: 1, kind: input, shape index: {}]   ;;  %s653_s2 = inlined_call_operand.vmem [shape: f32[1,128], index: 2, kind: input, shape index: {}]   ;;  %s654_s3 = inlined_call_operand.hbm [shape: bf16[16,128], index: 3, kind: output, shape index: {}]  }
   0x1   :  { %10 = vsyncpa [#allocation3 + $0x1], 0 }
   0x2   :  { %11 = vsyncpa [#allocation4], 0 }
   0x3   :  { %13 = vsyncpa [#allocation4 + $0x1], 0  ;;  %s483_s12 = smov 0   ;;  %s485_s13 = smov 0  }
   0x4   :  { %s487_s14 = smov 0   ;;  %s489_s15 = smov 0  }
   0x5 LB: > { %s504_s16 = sadd.s32 4294967295, %s459_s15   ;;  %s301_s17 = sadd.s32 4294967294, %s459_s15   ;;  %s459_s15 = sphi %s489_s15, %s669_s15   ;;  %s455_s14 = sphi %s487_s14, %s668_s14   ;;  %s451_s13 = sphi %s485_s13, %s667_s13   ;;  %s447_s12 = sphi %s483_s12, %s666_s12  }
   0x6   : > { %s508_s18 = sadd.s32 1, %s459_s15   ;;  %s26_s19 = sadd.s32 1, %s455_s14 }
   0x7   : > { %s23_s20 = ssub.s32 %s459_s15, %s508_s18  ;;  %p33_p0 = scmp.ne.s32.totalorder %s455_s14, %s451_s13 }
   0x8   : > { %p24_p1 = scmp.eq.s32.totalorder %s23_s20, 0  ;;  %p34_p2 = scmp.eq.s32.totalorder %s459_s15, 0 }
   0x9   : > { %p39_p3 = scmp.ne.s32.totalorder %s451_s13, %s447_s12  ;;  %p40_p4 = scmp.eq.s32.totalorder %s504_s16, 0 }
   0xa   : > { %s520_s21 = scalar_select %p24_p1, %s455_s14, %s26_s19  }
   0xb   : > { %p522_p5 = por %p34_p2, %p33_p0  ;;  %p526_p6 = por %p40_p4, %p39_p3 }
   0xc   : > { %p105_p7 = scmp.eq.s32.totalorder %s504_s16, 1  ;;  %p111_p8 = scmp.eq.s32.totalorder %s301_s17, 1 }
   0xd   : > { %p327_p10 = scmp.lt.s32.totalorder %s459_s15, 2  ;;  %s137_s26 = sand.u32 1, %s455_s14  }
   0xe   : > { %p533_p11 = por %p105_p7, %p33_p0  ;;  %p537_p12 = por %p111_p8, %p39_p3 }
   0xf   : > { %s305_s27 = sshll.u32 %s459_s15, 7  ;;  %s304_s28 = sshll.u32 %s137_s26, 3 }
  0x10   : > { %s658_s24 = scalar_select %p533_p11, 1, 0 }
  0x11   : > { %s659_s25 = scalar_select %p537_p12, 1, 0 }
  0x12   : > { %s546_s4 = scalar_lea.hbm %s651_s0, %s305_s27  ;;  %s141_s5 = scalar_lea.vmem [#allocation2], %s304_s28 }
  0x13   : > { %s148_s6 = sshll.u32 %s141_s5, 4  ;;  %p550_p13 = pnand %p327_p10, %p522_p5  ;;  %s554_s6 = int_to_ptr.vmem [resolvable:$true] %s148_s6 }
  0x14   : > { %s138_s8 = scalar_lea.sflag [#allocation3], %s137_s26  ;;  %s363_s9 = scalar_lea.hbm %s546_s4, 128 }
  0x15   : > { %p364_p2 = scmp.ne.s32.totalorder %s546_s4, %s363_s9  ;;  %p365_p3 = pneg %p550_p13 }
  0x16   : > { %s368_s17 = scalar_lea.hbm %s651_s0, 256  ;;  %p369_p5 = scmp.lt.u32.totalorder %s546_s4, %s651_s0 }
  0x17   : > { %p366_p4 = pnand %p365_p3, %p364_p2  ;;  %p370_p8 = scmp.lt.u32.totalorder %s368_s17, %s363_s9 }
  0x18   : > { %p372_p9 = scmp.lt.u32.totalorder %s363_s9, %s546_s4 }
  0x19   : > { %p367_p7 = pneg %p366_p4  ;;  %p371_p10 = por %p370_p8, %p369_p5 }
  0x1b   : > { %p373_p0 = por %p372_p9, %p371_p10 }
  0x1d   : > { %p374_p1 = pnand %p373_p0, %p367_p7 }
  0x1f   : > { %377 = shalt.err (!%p374_p1)
}
  0x20   : > { %s378_s22 = scalar_lea.vmem %s554_s6, 128  ;;  %s461_s26 = smov [#allocation2]  }
  0x21   : > { %p379_p2 = scmp.ne.s32.totalorder %s554_s6, %s378_s22  ;;  %s383_s27 = sshll.u32 %s461_s26, 4  ;;  %s384_s27 = int_to_ptr.vmem [resolvable:$false] %s383_s27 }
  0x22   : > { %s385_s28 = scalar_lea.vmem %s384_s27, 256  ;;  %p386_p11 = scmp.lt.s32.totalorder %s554_s6, %s384_s27 }
  0x23   : > { %p381_p4 = pnand %p379_p2, %p365_p3  ;;  %p387_p5 = scmp.lt.s32.totalorder %s385_s28, %s378_s22 }
  0x25   : > { %p382_p12 = pneg %p381_p4  ;;  %p388_p8 = por %p387_p5, %p386_p11 }
  0x27   : > { %p389_p9 = pnand %p388_p8, %p382_p12 }
  0x29   : > { %392 = shalt.err (!%p389_p9)
}
  0x2a   : > { %322 = dma.hbm_to_vmem [thread:$0]  (!%p550_p13), %s546_s4, 128, %s554_s6, %s138_s8  }
  0x2b   : > { %p661_p0 = scmp.lt.s32.totalorder %s459_s15, 3  ;;  %p662_p1 = scmp.ge.s32.totalorder %s459_s15, 1 }
  0x2d   : > { %p154_p3 = pnand %p662_p1, %p661_p0 }
  0x2e   : > { %s588_s29 = sand.u32 (!%p154_p3), 1, %s451_s13  }
  0x2f   : > { %157 = sbr.rel (%p154_p3) target bundleno = 383 (0x17f), region = 32  ;;  %s307_s30 = sshll.u32 (!%p154_p3), %s588_s29, 3 }
  0x30   : > { %s160_s5 = scalar_lea.sflag (!%p154_p3), [#allocation3], %s588_s29  ;;  %s163_s9 = scalar_lea.vmem (!%p154_p3), [#allocation2], %s307_s30 }
  0x36   : > { %438 = dma.done.wait (%p526_p6), %s160_s5, 128  }
  0x37   : > { %440 = vsyncadd (%p526_p6), %s160_s5, 4294967168  ;;  %v186_v0 = vld [vmem:[%s163_s9] sm:$0xff]  ;;  %s308_s4 = sshll.u32 %s588_s29, 2  ;;  %s312_s10 = sshll.u32 %s504_s16, 6 }
  0x38   : > { %189 = vadd.xlane.f32.xlu0 %v186_v0  ;;  %v309_v9 = vld [vmem:[%s652_s1] ss:$0 sm:$0xff]  ;;  %s185_s11 = scalar_lea.vmem [#allocation5], %s308_s4  ;;  %s607_s22 = scalar_lea.hbm %s654_s3, %s312_s10 }
  0x39   : > { %v310_v11 = vld [vmem:[%s653_s2] ss:$0 sm:$0xff]  ;;  %s231_s17 = sshll.u32 %s185_s11, 4  ;;  %s218_s26 = scalar_lea.sflag [#allocation4], %s588_s29  ;;  %s609_s17 = int_to_ptr.vmem [resolvable:$true] %s231_s17 }
  0x3a   : > { %s393_s27 = scalar_lea.vmem %s609_s17, 64  ;;  %p663_p11 = scmp.ne.s32.totalorder %s658_s24, 0 }
  0x3b   : > { %p394_p6 = scmp.ne.s32.totalorder %s609_s17, %s393_s27  ;;  %s462_s16 = smov [#allocation5]  }
  0x3c   : > { %s397_s28 = sshll.u32 %s462_s16, 4  ;;  %s398_s28 = int_to_ptr.vmem [resolvable:$false] %s397_s28 }
  0x3d   : > { %p395_p12 = pnand %p394_p6, %p663_p11  ;;  %s399_s30 = scalar_lea.vmem %s398_s28, 128 }
  0x3e   : > { %p400_p7 = scmp.lt.s32.totalorder %s609_s17, %s398_s28  ;;  %p401_p10 = scmp.lt.s32.totalorder %s399_s30, %s393_s27 }
  0x3f   : > { %p396_p13 = pneg %p395_p12 }
  0x40   : > { %p402_p2 = por %p401_p10, %p400_p7 }
  0x42   : > { %p403_p4 = pnand %p402_p2, %p396_p13 }
  0xc5   : > { %v190_v1 = vpop.xlane.xlu0 %189 }
  0xc6   : > { %v192_v2 = vmul.f32 0.0078125, %v190_v1 }
  0xc8   : > { %v193_v3 = vsub.f32 %v186_v0, %v192_v2 }
  0xca   : > { %v194_v4 = vmul.f32 %v193_v3, %v193_v3 }
  0xcc   : > { %195 = vadd.xlane.f32.xlu0 %v194_v4 }
 0x159   : > { %v196_v5 = vpop.xlane.xlu0 %195 }
 0x15a   : > { %v197_v6 = vmul.f32 0.0078125, %v196_v5 }
 0x15c   : > { %v198_v7 = vadd.f32 1e-12, %v197_v6 }
 0x15e   : > { %361 = vrsqrt.f32 %v198_v7 }
 0x168   : > { %v362_v8 = vpop.eup %361 }
 0x169   : > { %v200_v10 = vmul.f32 %v362_v8, %v193_v3 }
 0x16b   : > { %v207_v12 = vmul.f32 %v309_v9, %v200_v10 }
 0x16d   : > { %v214_v13 = vadd.f32 %v310_v11, %v207_v12 }
 0x16f   : > { %v215_v14 = vpack.c.bf16 %v214_v13, %v214_v13 }
 0x171   : > { %216 = vst [vmem:[%s185_s11] sm:$0xf] %v215_v14 }
 0x172   : > { %406 = shalt.err (!%p403_p4)
}
 0x173   : > { %s407_s29 = scalar_lea.hbm %s607_s22, 64  ;;  %s411_s4 = scalar_lea.hbm %s654_s3, 128 }
 0x174   : > { %p408_p5 = scmp.ne.s32.totalorder %s607_s22, %s407_s29  ;;  %p412_p0 = scmp.lt.u32.totalorder %s607_s22, %s654_s3 }
 0x175   : > { %p413_p1 = scmp.lt.u32.totalorder %s411_s4, %s407_s29  ;;  %p415_p6 = scmp.lt.u32.totalorder %s407_s29, %s607_s22 }
 0x176   : > { %p409_p8 = pnand %p408_p5, %p663_p11 }
 0x177   : > { %p414_p3 = por %p413_p1, %p412_p0 }
 0x178   : > { %p410_p9 = pneg %p409_p8 }
 0x179   : > { %p416_p12 = por %p415_p6, %p414_p3 }
 0x17b   : > { %p417_p13 = pnand %p416_p12, %p410_p9 }
 0x17d   : > { %420 = shalt.err (!%p417_p13)
}
 0x17e   : > { %317 = dma.vmem_to_hbm [thread:$0]  (%p663_p11), %s609_s17, 64, %s607_s22, %s218_s26  }
 0x17f PF: > { %s243_s23 = sand.u32 1, %s447_s12   ;;  %p664_p7 = scmp.ne.s32.totalorder %s659_s25, 0 }
 0x180   : > { %p665_p10 = scmp.ge.s32.totalorder %s459_s15, 2  ;;  %s244_s8 = scalar_lea.sflag [#allocation4], %s243_s23 }
 0x182   : > { %p324_p2 = pnand %p665_p10, %p664_p7 }
 0x184   : > { %442 = dma.done.wait (!%p324_p2), %s244_s8, 64  }
 0x185   : > { %444 = vsyncadd (!%p324_p2), %s244_s8, 4294967232  ;;  %p16_p4 = scmp.ge.s32.totalorder %s508_s18, 4   ;;  %s666_s12 = smov %s451_s13 }
 0x186   : > { %s667_s13 = smov %s455_s14  ;;  %s668_s14 = smov %s520_s21 }
 0x187   : > { %s669_s15 = smov %s508_s18  ;;  %18 = sbr.rel (!%p16_p4) target bundleno = 5 (0x5), region = 77 }
 0x18e   :  { %249 = vsyncpa [#allocation3], 1 }
 0x18f   :  { %251 = vsyncpa [#allocation3 + $0x1], 1 }
 0x190   :  { %252 = vsyncpa [#allocation4], 1 }
 0x191   :  { %254 = vsyncpa [#allocation4 + $0x1], 1 }

</bundles_post_ra>
